<compile_context>
chip_gen: v5e
topology: v5e:2x2
jax: 0.10.0
libtpu: 0.0.40
codegen_flags: <defaults>
</compile_context>

<pallas_src>
import jax
import jax.numpy as jnp
from jax.experimental import pallas as pl
from jax.experimental.pallas import tpu as pltpu

LANES = 128  # TPU vreg lane width


def make_dnn_params(w, b_linear, b_extra=None):
    """Fold the (always-zero) extra bias into the linear bias and flatten.

    w:        [in_f, out_f]   (transposed vs. PyTorch's [out, in])
    b_linear: [out_f]
    b_extra:  [out_f] or None
    Returns a 1-D f32 array of length in_f*out_f + out_f laid out as
    [w[0,0..out_f), w[1,0..out_f), ..., b[0..out_f)] -- destined for SMEM.
    """
    b = b_linear if b_extra is None else b_linear + b_extra
    return jnp.concatenate([w.reshape(-1), b.reshape(-1)]).astype(jnp.float32)


def dnn_kernel(params_ref, x_ref, o_ref):
    """o[n, :] = relu(sum_k w[k, n] * x[k, :] + b[n])  (VPU scalar*vector)."""
    in_f = x_ref.shape[0]
    out_f = o_ref.shape[0]
    rows = []
    for n in range(out_f):                       # static: out_f == 3
        acc = x_ref[0:1, :] * params_ref[n]      # f32 scalar * [1, TM]
        for k in range(1, in_f):                 # static: in_f == 2
            acc = acc + x_ref[k:k + 1, :] * params_ref[k * out_f + n]
        acc = acc + params_ref[in_f * out_f + n]
        rows.append(jnp.maximum(acc, 0.0))
    o_ref[...] = jnp.concatenate(rows, axis=0).astype(o_ref.dtype)


def dnn_forward_tb(params, x_t, out_f, *, tm=512):
    """Kernel-native layout: x_t [in_f, B] -> y_t [out_f, B]."""
    in_f, batch = x_t.shape

    if batch % tm == 0 and batch // tm > 1:
        # Large-B path: tile the batch (lane) axis; "parallel" lets v7x's two
        # TensorCores split the grid.  TM is a multiple of 128 lanes.
        return pl.pallas_call(
            dnn_kernel,
            out_shape=jax.ShapeDtypeStruct((out_f, batch), x_t.dtype),
            grid_spec=pltpu.PrefetchScalarGridSpec(
                num_scalar_prefetch=1,           # params -> SMEM, passed first
                grid=(batch // tm,),
                in_specs=[pl.BlockSpec((in_f, tm), lambda i, p: (0, i))],
                out_specs=pl.BlockSpec((out_f, tm), lambda i, p: (0, i)),
            ),
            compiler_params=pltpu.CompilerParams(
                dimension_semantics=("parallel",)),
        )(params, x_t)

    # Small-B path: whole arrays resident in VMEM, params in SMEM, no grid.
    return pl.pallas_call(
        dnn_kernel,
        out_shape=jax.ShapeDtypeStruct((out_f, batch), x_t.dtype),
        in_specs=[
            pl.BlockSpec(memory_space=pltpu.MemorySpace.SMEM),
            pl.BlockSpec(memory_space=pltpu.MemorySpace.VMEM),
        ],
        out_specs=pl.BlockSpec(memory_space=pltpu.MemorySpace.VMEM),
    )(params, x_t)


def dnn_forward(params, x, out_f, *, tm=512):
    """Module-compatible interface: x [B, in_f] -> [B, out_f].

    The two transposes are small XLA ops; pipelines that can produce /
    consume the [feature, batch] layout should call dnn_forward_tb directly.
    """
    y_t = dnn_forward_tb(params, x.T, out_f, tm=tm)
    return y_t.T


if __name__ == "__main__":
    key = jax.random.PRNGKey(0)
    k_w, k_b, k_x1, k_x2 = jax.random.split(key, 4)

    in_features, out_features = 2, 3

    # Mimic nn.Linear's U(-1/sqrt(fan_in), 1/sqrt(fan_in)) init.
    bound = 1.0 / jnp.sqrt(jnp.float32(in_features))
    # PyTorch weight is [out, in]; store transposed [in, out] for x @ W.
    w = jax.random.uniform(k_w, (in_features, out_features), jnp.float32,
                           minval=-bound, maxval=bound)
    b_linear = jax.random.uniform(k_b, (out_features,), jnp.float32,
                                  minval=-bound, maxval=bound)
    b_extra = jnp.zeros((out_features,), jnp.float32)  # self.bias = zeros([3])

    # Hoisted, once-per-model parameter prep (no per-call pads).
    params = make_dnn_params(w, b_linear, b_extra)

    # --- small batch: whole-array resident path (matches module interface) ---
    batch = 8
    x = jax.random.normal(k_x1, (batch, in_features), jnp.float32)
    out = dnn_forward(params, x, out_features)
    jax.block_until_ready(out)

    ref = jnp.maximum(x @ w + b_linear + b_extra, 0.0)
    assert out.shape == (batch, out_features)
    assert jnp.allclose(out, ref, atol=1e-5), "small-batch mismatch vs reference"

    # --- larger batch: lane-tiled 'parallel' grid path, kernel-native layout ---
    batch2 = 1024
    x2 = jax.random.normal(k_x2, (batch2, in_features), jnp.float32)
    out2_t = dnn_forward_tb(params, x2.T, out_features, tm=512)
    jax.block_until_ready(out2_t)

    ref2 = jnp.maximum(x2 @ w + b_linear + b_extra, 0.0)
    assert out2_t.shape == (out_features, batch2)
    assert jnp.allclose(out2_t.T, ref2, atol=1e-5), "tiled-batch mismatch vs reference"

    print("KERNEL_OK")
</pallas_src>

<mosaic_0001>
module attributes {stable_mosaic.version = 11 : i64} {
  func.func @dnn_kernel(%arg0: memref<9xf32, #tpu.memory_space<smem>>, %arg1: memref<2x8xf32, #tpu.memory_space<vmem>>, %arg2: memref<3x8xf32, #tpu.memory_space<vmem>>) attributes {dimension_semantics = [], scalar_prefetch = 0 : i64, scratch_operands = 0 : i64, tpu.core_type = #tpu.core_type<tc>} {
    %c0 = arith.constant 0 : index
    %c0_0 = arith.constant 0 : index
    %0 = vector.load %arg1[%c0, %c0_0] : memref<2x8xf32, #tpu.memory_space<vmem>>, vector<1x8xf32>
    %c0_1 = arith.constant 0 : index
    %1 = memref.load %arg0[%c0_1] : memref<9xf32, #tpu.memory_space<smem>>
    %2 = vector.broadcast %1 : f32 to vector<1x8xf32>
    %3 = arith.mulf %0, %2 : vector<1x8xf32>
    %c1 = arith.constant 1 : index
    %c0_2 = arith.constant 0 : index
    %4 = vector.load %arg1[%c1, %c0_2] : memref<2x8xf32, #tpu.memory_space<vmem>>, vector<1x8xf32>
    %c3 = arith.constant 3 : index
    %5 = memref.load %arg0[%c3] : memref<9xf32, #tpu.memory_space<smem>>
    %6 = vector.broadcast %5 : f32 to vector<1x8xf32>
    %7 = arith.mulf %4, %6 : vector<1x8xf32>
    %8 = arith.addf %3, %7 : vector<1x8xf32>
    %c6 = arith.constant 6 : index
    %9 = memref.load %arg0[%c6] : memref<9xf32, #tpu.memory_space<smem>>
    %10 = vector.broadcast %9 : f32 to vector<1x8xf32>
    %11 = arith.addf %8, %10 : vector<1x8xf32>
    %cst = arith.constant 0.000000e+00 : f32
    %12 = vector.broadcast %cst : f32 to vector<1x8xf32>
    %13 = arith.maximumf %11, %12 : vector<1x8xf32>
    %c0_3 = arith.constant 0 : index
    %c0_4 = arith.constant 0 : index
    %14 = vector.load %arg1[%c0_3, %c0_4] : memref<2x8xf32, #tpu.memory_space<vmem>>, vector<1x8xf32>
    %c1_5 = arith.constant 1 : index
    %15 = memref.load %arg0[%c1_5] : memref<9xf32, #tpu.memory_space<smem>>
    %16 = vector.broadcast %15 : f32 to vector<1x8xf32>
    %17 = arith.mulf %14, %16 : vector<1x8xf32>
    %c1_6 = arith.constant 1 : index
    %c0_7 = arith.constant 0 : index
    %18 = vector.load %arg1[%c1_6, %c0_7] : memref<2x8xf32, #tpu.memory_space<vmem>>, vector<1x8xf32>
    %c4 = arith.constant 4 : index
    %19 = memref.load %arg0[%c4] : memref<9xf32, #tpu.memory_space<smem>>
    %20 = vector.broadcast %19 : f32 to vector<1x8xf32>
    %21 = arith.mulf %18, %20 : vector<1x8xf32>
    %22 = arith.addf %17, %21 : vector<1x8xf32>
    %c7 = arith.constant 7 : index
    %23 = memref.load %arg0[%c7] : memref<9xf32, #tpu.memory_space<smem>>
    %24 = vector.broadcast %23 : f32 to vector<1x8xf32>
    %25 = arith.addf %22, %24 : vector<1x8xf32>
    %cst_8 = arith.constant 0.000000e+00 : f32
    %26 = vector.broadcast %cst_8 : f32 to vector<1x8xf32>
    %27 = arith.maximumf %25, %26 : vector<1x8xf32>
    %c0_9 = arith.constant 0 : index
    %c0_10 = arith.constant 0 : index
    %28 = vector.load %arg1[%c0_9, %c0_10] : memref<2x8xf32, #tpu.memory_space<vmem>>, vector<1x8xf32>
    %c2 = arith.constant 2 : index
    %29 = memref.load %arg0[%c2] : memref<9xf32, #tpu.memory_space<smem>>
    %30 = vector.broadcast %29 : f32 to vector<1x8xf32>
    %31 = arith.mulf %28, %30 : vector<1x8xf32>
    %c1_11 = arith.constant 1 : index
    %c0_12 = arith.constant 0 : index
    %32 = vector.load %arg1[%c1_11, %c0_12] : memref<2x8xf32, #tpu.memory_space<vmem>>, vector<1x8xf32>
    %c5 = arith.constant 5 : index
    %33 = memref.load %arg0[%c5] : memref<9xf32, #tpu.memory_space<smem>>
    %34 = vector.broadcast %33 : f32 to vector<1x8xf32>
    %35 = arith.mulf %32, %34 : vector<1x8xf32>
    %36 = arith.addf %31, %35 : vector<1x8xf32>
    %c8 = arith.constant 8 : index
    %37 = memref.load %arg0[%c8] : memref<9xf32, #tpu.memory_space<smem>>
    %38 = vector.broadcast %37 : f32 to vector<1x8xf32>
    %39 = arith.addf %36, %38 : vector<1x8xf32>
    %cst_13 = arith.constant 0.000000e+00 : f32
    %40 = vector.broadcast %cst_13 : f32 to vector<1x8xf32>
    %41 = arith.maximumf %39, %40 : vector<1x8xf32>
    %42 = tpu.concatenate %13, %27, %41 in 0 : vector<1x8xf32>, vector<1x8xf32>, vector<1x8xf32> -> vector<3x8xf32>
    %c0_14 = arith.constant 0 : index
    %c0_15 = arith.constant 0 : index
    %43 = vector.load %arg2[%c0_14, %c0_15] : memref<3x8xf32, #tpu.memory_space<vmem>>, vector<3x8xf32>
    tpu.vector_store %arg2[%c0_14, %c0_15], %42 {strides = array<i32>} : memref<3x8xf32, #tpu.memory_space<vmem>>, vector<3x8xf32>,
    return
  }
}

</mosaic_0001>

<bundles_post_ra>
// kernel: tpu_custom_call.1
= control target key start
LH: loop header
LB: loop body
LE: loop exit
PB: predicated region body
PF: predicated region fallthrough
CT: control target
= control target key end

     0   :  { %7 = vsyncpa [#allocation5], 0  ;;  %s208_s0 = inlined_call_operand.hbm [shape: f32[9], index: 0, kind: input, shape index: {}]   ;;  %s209_s1 = inlined_call_operand.hbm [shape: f32[2,8], index: 1, kind: input, shape index: {}]   ;;  %s210_s2 = inlined_call_operand.hbm [shape: f32[3,8], index: 2, kind: output, shape index: {}]  }
   0x1   :  { %8 = vsyncpa [#allocation3], 0 }
   0x2   :  { %9 = vsyncpa [#allocation4], 0  ;;  %s15_s11 = sshll.u32 %s208_s0, 4  ;;  %s24_s14 = sshll.u32 %s209_s1, 4  ;;  %s16_s11 = int_to_ptr.hbm [resolvable:$true] %s15_s11  ;;  %s25_s14 = int_to_ptr.hbm [resolvable:$true] %s24_s14 }
   0x3   :  { %s181_s15 = smov [#allocation2]   ;;  %s182_s16 = smov [#allocation6]  }
   0x4   :  { %18 = dma.hbm_to_smem %s16_s11, 16, %s181_s15, [#allocation5]  }
   0x5   :  { %s26_s17 = sshll.u32 %s182_s16, 4  ;;  %s27_s17 = int_to_ptr.vmem [resolvable:$true] %s26_s17 }
   0x6   :  { %29 = dma.hbm_to_vmem [thread:$0]  %s25_s14, 32, %s27_s17, [#allocation3]  }
   0x7   :  { %175 = dma.done.wait [#allocation5], 16  }
   0x8   :  { %176 = vsyncadd [#allocation5], 4294967280 }
   0x9   :  { %177 = dma.done.wait [#allocation3], 32  }
   0xa   :  { %178 = vsyncadd [#allocation3], 4294967264 }
   0xb   :  { %38 = sfence }
   0xc   :  { %s40_s18 = sld [smem:[#allocation2]]  ;;  %v39_v0 = vld [vmem:[#allocation6] sm:$0x1]  ;;  %v43_v3 = vld [vmem:[#allocation6 + $0x1] sm:$0x1]  ;;  %vm80_vm0 = vcmask 1040384  }
   0xd   :  { %s104_s19 = sld [smem:[#allocation2 + $0x3]]  ;;  %s183_s25 = smov [#allocation7]   ;;  %vm82_vm1 = vcmask 1041408   ;;  %vm84_vm2 = vcmask 59392  }
   0xe   :  { %s105_s0 = sld [smem:[#allocation2 + $0x6]]  ;;  %s91_s26 = sshll.u32 %s183_s25, 4  ;;  %s92_s26 = int_to_ptr.vmem [resolvable:$true] %s91_s26 }
   0xf   :  { %s106_s20 = sld [smem:[#allocation2 + $0x1]]  ;;  %s93_s29 = sshll.u32 %s210_s2, 4  ;;  %s94_s29 = int_to_ptr.hbm [resolvable:$true] %s93_s29 }
  0x10   :  { %s107_s21 = sld [smem:[#allocation2 + $0x4]] }
  0x11   :  { %s108_s22 = sld [smem:[#allocation2 + $0x7]] }
  0x12   :  { %v41_v1 = vstv %s40_s18  ;;  %s109_s1 = sld [smem:[#allocation2 + $0x2]] }
  0x13   :  { %v42_v2 = vmul.f32 %v41_v1, %v39_v0  ;;  %v45_v4 = vstv %s104_s19  ;;  %s110_s23 = sld [smem:[#allocation2 + $0x5]] }
  0x14   :  { %v46_v5 = vmul.f32 %v45_v4, %v43_v3  ;;  %s111_s24 = sld [smem:[#allocation2 + $0x8]]  ;;  %v49_v8 = vstv %s105_s0 }
  0x15   :  { %v53_v6 = vstv %s106_s20 }
  0x16   :  { %v47_v7 = vadd.f32 %v46_v5, %v42_v2  ;;  %v54_v9 = vmul.f32 %v53_v6, %v39_v0  ;;  %v56_v10 = vstv %s107_s21 }
  0x17   :  { %v57_v11 = vmul.f32 %v56_v10, %v43_v3  ;;  %v60_v12 = vstv %s108_s22 }
  0x18   :  { %v64_v13 = vstv %s109_s1  ;;  %v50_v14 = vadd.f32 %v49_v8, %v47_v7 }
  0x19   :  { %v58_v15 = vadd.f32 %v57_v11, %v54_v9  ;;  %v65_v16 = vmul.f32 %v64_v13, %v39_v0  ;;  %v67_v17 = vstv %s110_s23 }
  0x1a   :  { %v68_v18 = vmul.f32 %v67_v17, %v43_v3  ;;  %v71_v20 = vstv %s111_s24  ;;  %v51_v22 = vmax.f32 %v50_v14, 0.0 }
  0x1b   :  { %v61_v19 = vadd.f32 %v60_v12, %v58_v15 }
  0x1c   :  { %v69_v21 = vadd.f32 %v68_v18, %v65_v16 }
  0x1d   :  { %v62_v23 = vmax.f32 %v61_v19, 0.0 }
  0x1e   :  { %v72_v24 = vadd.f32 %v71_v20, %v69_v21 }
  0x1f   :  { %v75_v25 = vrot.slane %v62_v23, 7 }
  0x20   :  { %v73_v26 = vmax.f32 %v72_v24, 0.0 }
  0x21   :  { %v81_v27 = vsel %vm80_vm0, %v51_v22, %v75_v25 }
  0x22   :  { %v78_v28 = vrot.slane %v73_v26, 6 }
  0x24   :  { %v83_v29 = vsel %vm82_vm1, %v81_v27, %v78_v28 }
  0x25   :  { %85 = vst.msk [vmem:[#allocation7] sm:$0x7] %vm84_vm2, %v83_v29 }
  0x26   :  { %96 = dma.vmem_to_hbm [thread:$0]  %s92_s26, 64, %s94_s29, [#allocation4]  }
  0x27   :  { %179 = dma.done.wait [#allocation4], 64  }
  0x28   :  { %180 = vsyncadd [#allocation4], 4294967232 }
  0x29   :  { %101 = vsyncpa [#allocation3], 1 }
  0x2a   :  { %102 = vsyncpa [#allocation4], 1 }
  0x2b   :  { %103 = vsyncpa [#allocation5], 1 }

</bundles_post_ra>
